<compile_context>
chip_gen: v7x
topology: tpu7x:2x2x1
jax: 0.10.0
libtpu: 0.0.40
codegen_flags: <defaults>
</compile_context>

<pallas_src>
import functools
import math

import jax
import jax.numpy as jnp
from jax import lax
from jax.experimental import pallas as pl
from jax.experimental.pallas import tpu as pltpu

# Large-negative sentinel instead of -finfo.max: avoids -inf intermediates in the
# online-softmax rescale while giving identical results after softmax
# (masked weights underflow to exactly 0; fully-masked rows stay uniform).
_NEG_FILL = -1e30


def _sdpa_kernel(*refs, inv_scaler, masked):
    if masked:
        q_ref, k_ref, v_ref, mask_ref, o_ref, m_sc, l_sc, acc_sc = refs
    else:
        q_ref, k_ref, v_ref, o_ref, m_sc, l_sc, acc_sc = refs
        mask_ref = None

    kb = pl.program_id(2)  # key-block index (reduction axis, "arbitrary")

    @pl.when(kb == 0)
    def _():
        m_sc[...] = jnp.full_like(m_sc, -jnp.inf)
        l_sc[...] = jnp.zeros_like(l_sc)
        acc_sc[...] = jnp.zeros_like(acc_sc)

    # scores = q @ k^T * (1/sqrt(d_k)) — contraction over the last dim of both
    # operands (no explicit transpose). Inputs stay in their native dtype;
    # accumulate in f32 on the MXU.
    s = lax.dot_general(
        q_ref[...], k_ref[...],
        dimension_numbers=(((1,), (1,)), ((), ())),
        preferred_element_type=jnp.float32,
    ) * inv_scaler

    if masked:
        s = jnp.where(mask_ref[...] != 0, _NEG_FILL, s)

    # Online (flash-style) softmax over the key axis.
    m_prev = m_sc[...]
    m_new = jnp.maximum(m_prev, jnp.max(s, axis=-1, keepdims=True))
    alpha = jnp.exp(m_prev - m_new)
    p = jnp.exp(s - m_new)
    l_sc[...] = alpha * l_sc[...] + jnp.sum(p, axis=-1, keepdims=True)
    acc_sc[...] = alpha * acc_sc[...] + jnp.dot(
        p.astype(v_ref.dtype), v_ref[...], preferred_element_type=jnp.float32)
    m_sc[...] = m_new

    @pl.when(kb == pl.num_programs(2) - 1)
    def _():
        o_ref[...] = (acc_sc[...]
                      * pl.reciprocal(l_sc[...], approx=True)).astype(o_ref.dtype)


def _pick_tile(n, target, granule):
    """Largest t <= target with n % t == 0 and t % granule == 0; else full n."""
    if n <= target:
        return n
    t = (target // granule) * granule
    while t >= granule:
        if n % t == 0:
            return t
        t -= granule
    return n


def scaled_dot_product_attention(q, k, v, mask=None, *, d_k=None, tq=None, tk=None):
    """q: (B, Sq, d_k), k: (B, Sk, d_k), v: (B, Sk, d_v), mask: bool (B, Sq, Sk) or None."""
    B, Sq, Dk = q.shape
    _, Sk, _ = k.shape
    Dv = v.shape[-1]
    if d_k is None:
        d_k = Dk
    inv_scaler = 1.0 / math.sqrt(float(d_k))

    masked = mask is not None
    if masked:
        if mask.ndim != 3:
            raise ValueError(
                "mask.dim != attention_weight.dim, mask.dim={}, "
                "attention_weight.dim=3".format(mask.ndim))
        mask_i8 = mask.astype(jnp.int8)  # 4x less HBM traffic than int32

    # Tile sizes: Sq tile needs sublane granularity (8); Sk tile appears as the
    # mask's lane dim, so keep it a multiple of 128 (or the full extent).
    if tq is None:
        tq = _pick_tile(Sq, 256, 8)
    if tk is None:
        tk = _pick_tile(Sk, 512, 128)

    grid = (B, pl.cdiv(Sq, tq), pl.cdiv(Sk, tk))

    in_specs = [
        pl.BlockSpec((pl.Squeezed(), tq, Dk), lambda b, i, j: (b, i, 0)),
        pl.BlockSpec((pl.Squeezed(), tk, Dk), lambda b, i, j: (b, j, 0)),
        pl.BlockSpec((pl.Squeezed(), tk, Dv), lambda b, i, j: (b, j, 0)),
    ]
    inputs = [q, k, v]
    if masked:
        in_specs.append(
            pl.BlockSpec((pl.Squeezed(), tq, tk), lambda b, i, j: (b, i, j)))
        inputs.append(mask_i8)

    out_specs = pl.BlockSpec((pl.Squeezed(), tq, Dv), lambda b, i, j: (b, i, 0))

    kernel = functools.partial(_sdpa_kernel, inv_scaler=inv_scaler, masked=masked)

    return pl.pallas_call(
        kernel,
        out_shape=jax.ShapeDtypeStruct((B, Sq, Dv), q.dtype),
        grid_spec=pltpu.PrefetchScalarGridSpec(
            num_scalar_prefetch=0,
            grid=grid,
            in_specs=in_specs,
            out_specs=out_specs,
            scratch_shapes=[
                pltpu.VMEM((tq, 1), jnp.float32),   # running max m
                pltpu.VMEM((tq, 1), jnp.float32),   # running denom l
                pltpu.VMEM((tq, Dv), jnp.float32),  # running numerator acc
            ],
        ),
        compiler_params=pltpu.CompilerParams(
            dimension_semantics=("parallel", "parallel", "arbitrary"),
        ),
    )(*inputs)


def _reference(q, k, v, mask, d_k):
    qf = q.astype(jnp.float32)
    kf = k.astype(jnp.float32)
    vf = v.astype(jnp.float32)
    scores = jnp.einsum("bqd,bkd->bqk", qf, kf,
                        precision=lax.Precision.HIGHEST) / jnp.sqrt(jnp.float32(d_k))
    if mask is not None:
        scores = jnp.where(mask, -jnp.finfo(jnp.float32).max, scores)
    w = jax.nn.softmax(scores, axis=2)
    return jnp.einsum("bqk,bkd->bqd", w, vf, precision=lax.Precision.HIGHEST)


if __name__ == "__main__":
    key = jax.random.PRNGKey(0)
    kq, kk, kv, km = jax.random.split(key, 4)

    # --- Small case (single block per batch element) -------------------------
    B, Sq, Sk, d_k, d_v = 2, 8, 8, 32, 32
    q = jax.random.normal(kq, (B, Sq, d_k), dtype=jnp.float32)
    k = jax.random.normal(kk, (B, Sk, d_k), dtype=jnp.float32)
    v = jax.random.normal(kv, (B, Sk, d_v), dtype=jnp.float32)
    mask = jax.random.bernoulli(km, 0.2, (B, Sq, Sk))  # True = masked out

    out_nomask = jax.block_until_ready(
        scaled_dot_product_attention(q, k, v, mask=None, d_k=d_k))
    out_mask = jax.block_until_ready(
        scaled_dot_product_attention(q, k, v, mask=mask, d_k=d_k))

    ref_nomask = _reference(q, k, v, None, d_k)
    ref_mask = _reference(q, k, v, mask, d_k)
    # Tolerances account for the approximate (EUP) reciprocal in the epilogue.
    assert jnp.allclose(out_nomask, ref_nomask, atol=2e-3, rtol=2e-3)
    assert jnp.allclose(out_mask, ref_mask, atol=2e-3, rtol=2e-3)

    # --- Larger case exercising the tiled online-softmax path (2x2x2 grid) ---
    B2, S2, d2 = 2, 256, 64
    kq2, kk2, kv2, km2 = jax.random.split(jax.random.PRNGKey(1), 4)
    q2 = jax.random.normal(kq2, (B2, S2, d2), dtype=jnp.float32)
    k2 = jax.random.normal(kk2, (B2, S2, d2), dtype=jnp.float32)
    v2 = jax.random.normal(kv2, (B2, S2, d2), dtype=jnp.float32)
    mask2 = jax.random.bernoulli(km2, 0.15, (B2, S2, S2))

    out2 = jax.block_until_ready(
        scaled_dot_product_attention(q2, k2, v2, mask=mask2, d_k=d2, tq=128, tk=128))
    ref2 = _reference(q2, k2, v2, mask2, d2)
    assert jnp.allclose(out2, ref2, atol=2e-3, rtol=2e-3)

    # --- bf16 inputs stay bf16 on the MXU (f32 accumulation) -----------------
    qb, kb16, vb16 = (x.astype(jnp.bfloat16) for x in (q2, k2, v2))
    outb = jax.block_until_ready(
        scaled_dot_product_attention(qb, kb16, vb16, mask=mask2, d_k=d2,
                                     tq=128, tk=128))
    err = jnp.mean(jnp.abs(outb.astype(jnp.float32) - ref2))
    assert bool(jnp.isfinite(err)) and float(err) < 5e-2

    print("KERNEL_OK")
</pallas_src>

<mosaic_0001>
module attributes {stable_mosaic.version = 11 : i64} {
  func.func @_sdpa_kernel(%arg0: i32, %arg1: i32, %arg2: i32, %arg3: memref<1x8x32xf32, #tpu.memory_space<vmem>>, %arg4: memref<1x8x32xf32, #tpu.memory_space<vmem>>, %arg5: memref<1x8x32xf32, #tpu.memory_space<vmem>>, %arg6: memref<1x8x32xf32, #tpu.memory_space<vmem>>, %arg7: memref<8x1xf32, #tpu.memory_space<vmem>>, %arg8: memref<8x1xf32, #tpu.memory_space<vmem>>, %arg9: memref<8x32xf32, #tpu.memory_space<vmem>>) attributes {dimension_semantics = [#tpu.dimension_semantics<parallel>, #tpu.dimension_semantics<parallel>, #tpu.dimension_semantics<arbitrary>], iteration_bounds = array<i64: 2, 1, 1>, scalar_prefetch = 0 : i64, scratch_operands = 3 : i64, tpu.core_type = #tpu.core_type<tc>, window_params = [{transform_indices = @transform_0, window_bounds = array<i64: 1, 8, 32>}, {transform_indices = @transform_1, window_bounds = array<i64: 1, 8, 32>}, {transform_indices = @transform_2, window_bounds = array<i64: 1, 8, 32>}, {transform_indices = @transform_3, window_bounds = array<i64: 1, 8, 32>}]} {
    %c0_i32 = arith.constant 0 : i32
    %0 = arith.cmpi eq, %arg2, %c0_i32 : i32
    %1 = arith.extui %0 : i1 to i32
    %c0_i32_0 = arith.constant 0 : i32
    %2 = arith.cmpi ne, %1, %c0_i32_0 : i32
    scf.if %2 {
      %cst_27 = arith.constant 0xFF800000 : f32
      %37 = vector.broadcast %cst_27 : f32 to vector<8x1xf32>
      %c0_28 = arith.constant 0 : index
      %c0_29 = arith.constant 0 : index
      %38 = vector.load %arg7[%c0_28, %c0_29] : memref<8x1xf32, #tpu.memory_space<vmem>>, vector<8x1xf32>
      tpu.vector_store %arg7[%c0_28, %c0_29], %37 {strides = array<i32>} : memref<8x1xf32, #tpu.memory_space<vmem>>, vector<8x1xf32>,
      %cst_30 = arith.constant 0.000000e+00 : f32
      %39 = vector.broadcast %cst_30 : f32 to vector<8x1xf32>
      %c0_31 = arith.constant 0 : index
      %c0_32 = arith.constant 0 : index
      %40 = vector.load %arg8[%c0_31, %c0_32] : memref<8x1xf32, #tpu.memory_space<vmem>>, vector<8x1xf32>
      tpu.vector_store %arg8[%c0_31, %c0_32], %39 {strides = array<i32>} : memref<8x1xf32, #tpu.memory_space<vmem>>, vector<8x1xf32>,
      %cst_33 = arith.constant 0.000000e+00 : f32
      %41 = vector.broadcast %cst_33 : f32 to vector<8x32xf32>
      %c0_34 = arith.constant 0 : index
      %c0_35 = arith.constant 0 : index
      %42 = vector.load %arg9[%c0_34, %c0_35] : memref<8x32xf32, #tpu.memory_space<vmem>>, vector<8x32xf32>
      tpu.vector_store %arg9[%c0_34, %c0_35], %41 {strides = array<i32>} : memref<8x32xf32, #tpu.memory_space<vmem>>, vector<8x32xf32>,
    } else {
    }
    %c0 = arith.constant 0 : index
    %c0_1 = arith.constant 0 : index
    %c0_2 = arith.constant 0 : index
    %3 = vector.load %arg3[%c0, %c0_1, %c0_2] : memref<1x8x32xf32, #tpu.memory_space<vmem>>, vector<1x8x32xf32>
    %4 = vector.shape_cast %3 : vector<1x8x32xf32> to vector<8x32xf32>
    %c0_3 = arith.constant 0 : index
    %c0_4 = arith.constant 0 : index
    %c0_5 = arith.constant 0 : index
    %5 = vector.load %arg4[%c0_3, %c0_4, %c0_5] : memref<1x8x32xf32, #tpu.memory_space<vmem>>, vector<1x8x32xf32>
    %6 = vector.shape_cast %5 : vector<1x8x32xf32> to vector<8x32xf32>
    %cst = arith.constant dense<0.000000e+00> : vector<8x8xf32>
    %7 = tpu.matmul %4, %6, %cst {dimension_numbers = #tpu.dot_dimension_numbers<[1], [1], [0], [0], [0, 0, 1, 0], [], []>} : vector<8x32xf32>, vector<8x32xf32>, vector<8x8xf32> -> vector<8x8xf32>
    %cst_6 = arith.constant 0.176776692 : f32
    %8 = vector.broadcast %cst_6 : f32 to vector<8x8xf32>
    %9 = arith.mulf %7, %8 : vector<8x8xf32>
    %c0_7 = arith.constant 0 : index
    %c0_8 = arith.constant 0 : index
    %10 = vector.load %arg7[%c0_7, %c0_8] : memref<8x1xf32, #tpu.memory_space<vmem>>, vector<8x1xf32>
    %cst_9 = arith.constant dense<0xFF800000> : vector<8xf32>
    %11 = vector.multi_reduction <maximumf>, %9, %cst_9 [1] : vector<8x8xf32> to vector<8xf32>
    %12 = vector.shape_cast %11 : vector<8xf32> to vector<8x1xf32>
    %13 = arith.maximumf %10, %12 : vector<8x1xf32>
    %14 = arith.subf %10, %13 : vector<8x1xf32>
    %15 = math.exp %14 : vector<8x1xf32>
    %16 = vector.broadcast %13 : vector<8x1xf32> to vector<8x8xf32>
    %17 = arith.subf %9, %16 : vector<8x8xf32>
    %18 = math.exp %17 : vector<8x8xf32>
    %c0_10 = arith.constant 0 : index
    %c0_11 = arith.constant 0 : index
    %19 = vector.load %arg8[%c0_10, %c0_11] : memref<8x1xf32, #tpu.memory_space<vmem>>, vector<8x1xf32>
    %20 = arith.mulf %15, %19 : vector<8x1xf32>
    %cst_12 = arith.constant dense<0.000000e+00> : vector<8xf32>
    %21 = vector.multi_reduction <add>, %18, %cst_12 [1] : vector<8x8xf32> to vector<8xf32>
    %22 = vector.shape_cast %21 : vector<8xf32> to vector<8x1xf32>
    %23 = arith.addf %20, %22 : vector<8x1xf32>
    %c0_13 = arith.constant 0 : index
    %c0_14 = arith.constant 0 : index
    %24 = vector.load %arg8[%c0_13, %c0_14] : memref<8x1xf32, #tpu.memory_space<vmem>>, vector<8x1xf32>
    tpu.vector_store %arg8[%c0_13, %c0_14], %23 {strides = array<i32>} : memref<8x1xf32, #tpu.memory_space<vmem>>, vector<8x1xf32>,
    %c0_15 = arith.constant 0 : index
    %c0_16 = arith.constant 0 : index
    %25 = vector.load %arg9[%c0_15, %c0_16] : memref<8x32xf32, #tpu.memory_space<vmem>>, vector<8x32xf32>
    %26 = vector.broadcast %15 : vector<8x1xf32> to vector<8x32xf32>
    %27 = arith.mulf %26, %25 : vector<8x32xf32>
    %c0_17 = arith.constant 0 : index
    %c0_18 = arith.constant 0 : index
    %c0_19 = arith.constant 0 : index
    %28 = vector.load %arg5[%c0_17, %c0_18, %c0_19] : memref<1x8x32xf32, #tpu.memory_space<vmem>>, vector<1x8x32xf32>
    %29 = vector.shape_cast %28 : vector<1x8x32xf32> to vector<8x32xf32>
    %cst_20 = arith.constant dense<0.000000e+00> : vector<8x32xf32>
    %30 = tpu.matmul %18, %29, %cst_20 {dimension_numbers = #tpu.dot_dimension_numbers<[1], [0], [0], [1], [0, 0, 1, 1], [], []>} : vector<8x8xf32>, vector<8x32xf32>, vector<8x32xf32> -> vector<8x32xf32>
    %31 = arith.addf %27, %30 : vector<8x32xf32>
    %c0_21 = arith.constant 0 : index
    %c0_22 = arith.constant 0 : index
    %32 = vector.load %arg9[%c0_21, %c0_22] : memref<8x32xf32, #tpu.memory_space<vmem>>, vector<8x32xf32>
    tpu.vector_store %arg9[%c0_21, %c0_22], %31 {strides = array<i32>} : memref<8x32xf32, #tpu.memory_space<vmem>>, vector<8x32xf32>,
    %c0_23 = arith.constant 0 : index
    %c0_24 = arith.constant 0 : index
    %33 = vector.load %arg7[%c0_23, %c0_24] : memref<8x1xf32, #tpu.memory_space<vmem>>, vector<8x1xf32>
    tpu.vector_store %arg7[%c0_23, %c0_24], %13 {strides = array<i32>} : memref<8x1xf32, #tpu.memory_space<vmem>>, vector<8x1xf32>,
    %c0_i32_25 = arith.constant 0 : i32
    %34 = arith.cmpi eq, %arg2, %c0_i32_25 : i32
    %35 = arith.extui %34 : i1 to i32
    %c0_i32_26 = arith.constant 0 : i32
    %36 = arith.cmpi ne, %35, %c0_i32_26 : i32
    scf.if %36 {
      %c0_27 = arith.constant 0 : index
      %c0_28 = arith.constant 0 : index
      %37 = vector.load %arg9[%c0_27, %c0_28] : memref<8x32xf32, #tpu.memory_space<vmem>>, vector<8x32xf32>
      %c0_29 = arith.constant 0 : index
      %c0_30 = arith.constant 0 : index
      %38 = vector.load %arg8[%c0_29, %c0_30] : memref<8x1xf32, #tpu.memory_space<vmem>>, vector<8x1xf32>
      %39 = tpu.reciprocal %38 {approx = true} : vector<8x1xf32> -> vector<8x1xf32>
      %40 = vector.broadcast %39 : vector<8x1xf32> to vector<8x32xf32>
      %41 = arith.mulf %37, %40 : vector<8x32xf32>
      %c0_31 = arith.constant 0 : index
      %c0_32 = arith.constant 0 : index
      %c0_33 = arith.constant 0 : index
      %42 = vector.load %arg6[%c0_31, %c0_32, %c0_33] : memref<1x8x32xf32, #tpu.memory_space<vmem>>, vector<1x8x32xf32>
      %43 = vector.shape_cast %42 : vector<1x8x32xf32> to vector<8x32xf32>
      %44 = vector.shape_cast %41 : vector<8x32xf32> to vector<1x8x32xf32>
      tpu.vector_store %arg6[%c0_31, %c0_32, %c0_33], %44 {strides = array<i32>} : memref<1x8x32xf32, #tpu.memory_space<vmem>>, vector<1x8x32xf32>,
    } else {
    }
    return
  }
  func.func @transform_0(%arg0: i32, %arg1: i32, %arg2: i32) -> (i32, i32, i32) {
    %c0_i32 = arith.constant 0 : i32
    %c0_i32_0 = arith.constant 0 : i32
    return %arg0, %arg1, %c0_i32 : i32, i32, i32
  }
  func.func @transform_1(%arg0: i32, %arg1: i32, %arg2: i32) -> (i32, i32, i32) {
    %c0_i32 = arith.constant 0 : i32
    %c0_i32_0 = arith.constant 0 : i32
    return %arg0, %arg2, %c0_i32 : i32, i32, i32
  }
  func.func @transform_2(%arg0: i32, %arg1: i32, %arg2: i32) -> (i32, i32, i32) {
    %c0_i32 = arith.constant 0 : i32
    %c0_i32_0 = arith.constant 0 : i32
    return %arg0, %arg2, %c0_i32 : i32, i32, i32
  }
  func.func @transform_3(%arg0: i32, %arg1: i32, %arg2: i32) -> (i32, i32, i32) {
    %c0_i32 = arith.constant 0 : i32
    %c0_i32_0 = arith.constant 0 : i32
    return %arg0, %arg1, %c0_i32 : i32, i32, i32
  }
}

</mosaic_0001>

<bundles_post_ra>
// kernel: tpu_custom_call.1
= control target key start
LH: loop header
LB: loop body
LE: loop exit
PB: predicated region body
PF: predicated region fallthrough
CT: control target
= control target key end

     0   :  { %s1243_s0 = inlined_call_operand.hbm [shape: f32[2,8,32], index: 0, kind: input, shape index: {}]   ;;  %s1244_s1 = inlined_call_operand.hbm [shape: f32[2,8,32], index: 1, kind: input, shape index: {}]   ;;  %s1245_s2 = inlined_call_operand.hbm [shape: f32[2,8,32], index: 2, kind: input, shape index: {}]   ;;  %s1246_s3 = inlined_call_operand.hbm [shape: f32[2,8,32], index: 3, kind: output, shape index: {}]  }
   0x1   :  { %1252 = sst [smem:[#allocation18_spill]] %s1244_s1 }
   0x2   :  { %8 = vsyncpa [#allocation6], 0 }
   0x3   :  { %10 = vsyncpa [#allocation6 + $0x1], 0 }
   0x4   :  { %11 = vsyncpa [#allocation9], 0 }
   0x5   :  { %13 = vsyncpa [#allocation9 + $0x1], 0 }
   0x6   :  { %14 = vsyncpa [#allocation7], 0 }
   0x7   :  { %16 = vsyncpa [#allocation7 + $0x1], 0  ;;  %s967_s12 = smov 0   ;;  %s969_s13 = smov 0  }
   0x8   :  { %s971_s14 = smov 0   ;;  %s973_s15 = smov 0  }
   0x9   :  { %s975_s16 = smov 0   ;;  %s977_s17 = smov 0  }
   0xa LB: > { %1253 = sst [smem:[#allocation15_spill]] %s933_s16  ;;  %s998_s18 = sadd.s32 4294967295, %s937_s17   ;;  %s937_s17 = sphi %s977_s17, %s22_s17   ;;  %s933_s16 = sphi %s975_s16, %s1274_s16   ;;  %s929_s15 = sphi %s973_s15, %s1273_s15   ;;  %s925_s14 = sphi %s971_s14, %s1277_s14   ;;  %s921_s13 = sphi %s969_s13, %s1276_s13   ;;  %s917_s12 = sphi %s967_s12, %s1275_s12  }
   0xb   : > { %s642_s19 = sadd.s32 4294967294, %s937_s17   ;;  %s41_s20 = sadd.s32 1, %s933_s16 }
   0xc   : > { %s50_s21 = sadd.s32 1, %s925_s14  ;;  %p43_p0 = scmp.ge.s32.totalorder %s41_s20, 2 }
   0xd   : > { %p57_p1 = scmp.ne.s32.totalorder %s925_s14, %s921_s13  ;;  %p58_p2 = scmp.eq.s32.totalorder %s937_s17, 0 }
   0xe   : > { %p63_p3 = scmp.ne.s32.totalorder %s921_s13, %s917_s12  ;;  %s1279_s20 = smov (%p43_p0, %s41_s20), 0 }
   0xf   : > { %1254 = sst [smem:[#allocation16_spill]] %s1279_s20  ;;  %p1010_p4 = por %p58_p2, %p57_p1 }
  0x10   : > { %p64_p5 = scmp.eq.s32.totalorder %s998_s18, 0  ;;  %s45_s23 = ssub.s32 %s933_s16, %s1279_s20 }
  0x11   : > { %p145_p6 = scmp.eq.s32.totalorder %s998_s18, 1  ;;  %p48_p7 = scmp.eq.s32.totalorder %s45_s23, 0 }
  0x12   : > { %p1018_p8 = por %p64_p5, %p63_p3  ;;  %p151_p10 = scmp.eq.s32.totalorder %s642_s19, 1 }
  0x13   : > { %p1022_p9 = por %p145_p6, %p57_p1  ;;  %p699_p13 = scmp.lt.s32.totalorder %s937_s17, 2 }
  0x14   : > { %s1256_s24 = scalar_select %p1018_p8, 1, 0 }
  0x15   : > { %s1257_s25 = scalar_select %p1022_p9, 1, 0 }
  0x16   : > { %s1027_s26 = scalar_select %p48_p7, %s925_s14, %s50_s21  }
  0x17   : > { %p1029_p11 = por %p151_p10, %p63_p3  ;;  %s171_s28 = sand.u32 1, %s925_s14  }
  0x18   : > { %1258 = sst [smem:[#allocation17_spill]] %s1027_s26  ;;  %s1038_s29 = sshll.u32 %s171_s28, 3 }
  0x19   : > { %s1259_s27 = scalar_select %p1029_p11, 1, 0 }
  0x1a   : > { %s1041_s30 = sshll.u32 %s933_s16, 7  ;;  %p1045_p0 = pnand %p699_p13, %p1010_p4 }
  0x1b   : > { %s190_s5 = sand.u32 1, %s937_s17   ;;  %s1261_s1 = sld [smem:[#allocation18_spill]] }
  0x1c   : > { %s1260_s4 = scalar_select %p1045_p0, 1, 0 }
  0x1d   : > { %s194_s9 = scalar_lea.vmem [#allocation8], %s1038_s29  ;;  %s1061_s11 = scalar_lea.sflag [#allocation9], %s190_s5 }
  0x1e   : > { %s202_s10 = sshll.u32 %s194_s9, 4  ;;  %p1067_p4 = pneg %p1045_p0  ;;  %s1058_s10 = int_to_ptr.vmem [resolvable:$true] %s202_s10 }
  0x21   : > { %s1054_s8 = scalar_lea.hbm %s1261_s1, %s1041_s30  ;;  %s766_s6 = scalar_lea.hbm %s1261_s1, 256 }
  0x22   : > { %s761_s19 = scalar_lea.hbm %s1054_s8, 128  ;;  %p767_p7 = scmp.lt.u32.totalorder %s1054_s8, %s1261_s1 }
  0x23   : > { %p762_p3 = scmp.ne.s32.totalorder %s1054_s8, %s761_s19  ;;  %p768_p10 = scmp.lt.u32.totalorder %s766_s6, %s761_s19 }
  0x24   : > { %p770_p12 = scmp.lt.u32.totalorder %s761_s19, %s1054_s8 }
  0x25   : > { %p764_p5 = pnand %p1067_p4, %p762_p3  ;;  %p769_p13 = por %p768_p10, %p767_p7 }
  0x27   : > { %p765_p6 = pneg %p764_p5  ;;  %p771_p1 = por %p770_p12, %p769_p13 }
  0x29   : > { %p772_p2 = pnand %p771_p1, %p765_p6 }
  0x2b   : > { %775 = shalt.err (!%p772_p2)
}
  0x2c   : > { %s776_s5 = scalar_lea.vmem %s1058_s10, 128  ;;  %s939_s22 = smov [#allocation8]  }
  0x2d   : > { %p777_p3 = scmp.ne.s32.totalorder %s1058_s10, %s776_s5  ;;  %s781_s23 = sshll.u32 %s939_s22, 4  ;;  %s782_s23 = int_to_ptr.vmem [resolvable:$false] %s781_s23 }
  0x2e   : > { %s783_s7 = scalar_lea.vmem %s782_s23, 256  ;;  %p784_p9 = scmp.lt.s32.totalorder %s1058_s10, %s782_s23 }
  0x2f   : > { %p779_p5 = pnand %p777_p3, %p1067_p4  ;;  %p785_p8 = scmp.lt.s32.totalorder %s783_s7, %s776_s5 }
  0x31   : > { %p780_p11 = pneg %p779_p5  ;;  %p786_p7 = por %p785_p8, %p784_p9 }
  0x33   : > { %p787_p10 = pnand %p786_p7, %p780_p11 }
  0x35   : > { %790 = shalt.err (!%p787_p10)
}
  0x36   : > { %691 = dma.hbm_to_vmem [thread:$0]  (!%p1045_p0), %s1054_s8, 128, %s1058_s10, %s1061_s11  }
  0x37   : > { %p1263_p12 = scmp.lt.s32.totalorder %s937_s17, 3  ;;  %p1264_p1 = scmp.ge.s32.totalorder %s937_s17, 1 }
  0x38   : > { %s1103_s5 = scalar_lea.hbm %s1243_s0, %s1041_s30  ;;  %s175_s22 = scalar_lea.vmem [#allocation5], %s1038_s29 }
  0x39   : > { %p1095_p2 = pnand %p1264_p1, %p1263_p12  ;;  %s183_s23 = sshll.u32 %s175_s22, 4  ;;  %s1106_s23 = int_to_ptr.vmem [resolvable:$true] %s183_s23 }
  0x3a   : > { %s1112_s7 = scalar_lea.hbm %s1245_s2, %s1041_s30  ;;  %s172_s1 = scalar_lea.sflag [#allocation6], %s171_s28 }
  0x3b   : > { %s1265_s19 = scalar_select %p1095_p2, 1, 0 }
  0x3c   : > { %s791_s20 = scalar_lea.hbm %s1103_s5, 128  ;;  %s796_s16 = scalar_lea.hbm %s1243_s0, 256 }
  0x3d   : > { %p792_p8 = scmp.ne.s32.totalorder %s1103_s5, %s791_s20  ;;  %p797_p6 = scmp.lt.u32.totalorder %s1103_s5, %s1243_s0 }
  0x3e   : > { %p798_p13 = scmp.lt.u32.totalorder %s796_s16, %s791_s20  ;;  %p800_p5 = scmp.lt.u32.totalorder %s791_s20, %s1103_s5 }
  0x3f   : > { %p794_p9 = pnand %p792_p8, %p1067_p4 }
  0x40   : > { %p799_p3 = por %p798_p13, %p797_p6 }
  0x41   : > { %p795_p11 = pneg %p794_p9 }
  0x42   : > { %p801_p7 = por %p800_p5, %p799_p3 }
  0x44   : > { %p802_p10 = pnand %p801_p7, %p795_p11 }
  0x46   : > { %805 = shalt.err (!%p802_p10)
}
  0x47   : > { %s806_s28 = scalar_lea.vmem %s1106_s23, 128  ;;  %s940_s30 = smov [#allocation5]  }
  0x48   : > { %p807_p12 = scmp.ne.s32.totalorder %s1106_s23, %s806_s28  ;;  %s811_s8 = sshll.u32 %s940_s30, 4  ;;  %s812_s8 = int_to_ptr.vmem [resolvable:$false] %s811_s8 }
  0x49   : > { %s813_s26 = scalar_lea.vmem %s812_s8, 256  ;;  %p814_p9 = scmp.lt.s32.totalorder %s1106_s23, %s812_s8 }
  0x4a   : > { %p809_p1 = pnand %p807_p12, %p1067_p4  ;;  %p815_p2 = scmp.lt.s32.totalorder %s813_s26, %s806_s28 }
  0x4c   : > { %p810_p8 = pneg %p809_p1  ;;  %p816_p6 = por %p815_p2, %p814_p9 }
  0x4e   : > { %p817_p13 = pnand %p816_p6, %p810_p8 }
  0x50   : > { %820 = shalt.err (!%p817_p13)
}
  0x51   : > { %688 = dma.hbm_to_vmem [thread:$0]  (!%p1045_p0), %s1103_s5, 128, %s1106_s23, %s172_s1  }
  0x52   : > { %s213_s16 = scalar_lea.vmem [#allocation10], %s1038_s29  ;;  %s821_s10 = scalar_lea.hbm %s1112_s7, 128 }
  0x53   : > { %s221_s20 = sshll.u32 %s213_s16, 4  ;;  %p822_p11 = scmp.ne.s32.totalorder %s1112_s7, %s821_s10  ;;  %s222_s20 = int_to_ptr.vmem [resolvable:$true] %s221_s20 }
  0x54   : > { %s826_s22 = scalar_lea.hbm %s1245_s2, 256  ;;  %p827_p5 = scmp.lt.u32.totalorder %s1112_s7, %s1245_s2 }
  0x55   : > { %p824_p2 = pnand %p822_p11, %p1067_p4  ;;  %p828_p7 = scmp.lt.u32.totalorder %s826_s22, %s821_s10 }
  0x56   : > { %p830_p12 = scmp.lt.u32.totalorder %s821_s10, %s1112_s7 }
  0x57   : > { %p825_p3 = pneg %p824_p2  ;;  %p829_p10 = por %p828_p7, %p827_p5 }
  0x59   : > { %p831_p1 = por %p830_p12, %p829_p10 }
  0x5b   : > { %p832_p8 = pnand %p831_p1, %p825_p3 }
  0x5d   : > { %835 = shalt.err (!%p832_p8)
}
  0x5e   : > { %s836_s1 = scalar_lea.vmem %s222_s20, 128  ;;  %s941_s29 = smov [#allocation10]  }
  0x5f   : > { %p837_p9 = scmp.ne.s32.totalorder %s222_s20, %s836_s1  ;;  %s841_s5 = sshll.u32 %s941_s29, 4  ;;  %s842_s5 = int_to_ptr.vmem [resolvable:$false] %s841_s5 }
  0x60   : > { %s843_s23 = scalar_lea.vmem %s842_s5, 256  ;;  %p844_p11 = scmp.lt.s32.totalorder %s222_s20, %s842_s5 }
  0x61   : > { %p839_p6 = pnand %p837_p9, %p1067_p4  ;;  %p845_p2 = scmp.lt.s32.totalorder %s843_s23, %s836_s1 }
  0x63   : > { %p840_p13 = pneg %p839_p6  ;;  %p846_p0 = por %p845_p2, %p844_p11 }
  0x65   : > { %p847_p5 = pnand %p846_p0, %p840_p13 }
  0x67   : > { %850 = shalt.err (!%p847_p5)
}
  0x68   : > { %p1266_p7 = scmp.ne.s32.totalorder %s1260_s4, 0  ;;  %p1267_p3 = scmp.ne.s32.totalorder %s1265_s19, 0 }
  0x69   : > { %s1159_s21 = sand.u32 (!%p1267_p3), 1, %s921_s13   ;;  %p1268_p0 = scmp.ne.s32.totalorder (!%p1267_p3), %s1256_s24, 0 }
  0x6a   : > { %694 = dma.hbm_to_vmem [thread:$0]  (!%p1266_p7), %s1112_s7, 128, %s222_s20, %s1061_s11  }
  0x6b   : > { %230 = sbr.rel (%p1267_p3) target bundleno = 934 (0x3a6), region = 32  ;;  %s1162_s8 = sshll.u32 (!%p1267_p3), %s1159_s21, 3 }
  0x6c   : > { %s233_s26 = scalar_lea.sflag (!%p1267_p3), [#allocation6], %s1159_s21  ;;  %s236_s16 = scalar_lea.vmem (!%p1267_p3), [#allocation5], %s1162_s8 }
  0x72   : > { %904 = dma.done.wait (%p1268_p0), %s233_s26, 128  }
  0x73   : > { %906 = vsyncadd (%p1268_p0), %s233_s26, 4294967168  ;;  %s241_s4 = sand.u32 1, %s998_s18   ;;  %s245_s19 = scalar_lea.vmem [#allocation8], %s1162_s8 }
  0x74   : > { %s242_s11 = scalar_lea.sflag [#allocation9], %s241_s4 }
  0x75   : > { %908 = dma.done.wait (%p1268_p0), %s242_s11, 256  }
  0x76   : > { %910 = vsyncadd (%p1268_p0), %s242_s11, 4294967040  ;;  %vm294_vm0 = vcmask 261120   ;;  %v942_v0 = vmov 0.0   ;;  %vm943_vm1 = vmmov 0   ;;  %v297_v1 = vld [vmem:[%s245_s19] sm:$0xff]  ;;  %v296_v2 = vld [vmem:[%s236_s16] sm:$0xff] }
  0x77   : > { %667 = vmatprep.subr.mxu0 %v942_v0  ;;  %295 = vst.msk [vmem:[#allocation4] sm:$0xff] %vm294_vm0, %v942_v0  ;;  %669 = vmatprep.mubr.msk.f32.mxu0 %vm943_vm1, %v942_v0  ;;  %vm291_vm2 = vcmask 7168   ;;  %v944_v3 = vmov -inf   ;;  %vm377_vm3 = vcmask 64512   ;;  %v945_v8 = vmov 0   ;;  %s254_s18 = scalar_lea.vmem [#allocation10], %s1162_s8 }
  0x78   : > { %672 = vmatprep.subr.mxu1 %v942_v0  ;;  %674 = vmatprep.mubr.msk.f32.mxu1 %vm943_vm1, %v942_v0  ;;  %292 = vst.msk [vmem:[#allocation2] sm:$0xff] %vm291_vm2, %v944_v3  ;;  %293 = vst.msk [vmem:[#allocation3] sm:$0xff] %vm291_vm2, %v942_v0  ;;  %v408_v13 = vld [vmem:[%s254_s18] sm:$0xff]  ;;  %s660_s24 = sshll.u32 %s929_s15, 7  ;;  %s286_s7 = scalar_lea.vmem [#allocation11], %s1162_s8 }
  0x79   : > { %668 = vmatpush3.xpose.msk.msra.mxu0 %vm294_vm0, %v297_v1  ;;  %753 = vset.pattern.permute.xlu0 %v945_v8  ;;  %s513_s20 = sshll.u32 %s286_s7, 4  ;;  %s1193_s9 = scalar_lea.hbm %s1246_s3, %s660_s24  ;;  %s1195_s20 = int_to_ptr.vmem [resolvable:$true] %s513_s20 }
  0x7a   : > { %754 = vset.pattern.permute.xlu1 %v945_v8  ;;  %673 = vmatpush3.msra.mxu1 %v408_v13  ;;  %s499_s22 = scalar_lea.sflag [#allocation7], %s1159_s21  ;;  %s851_s28 = scalar_lea.vmem %s1195_s20, 128 }
  0x7b   : > { %p852_p4 = scmp.ne.s32.totalorder %s1195_s20, %s851_s28  ;;  %p1269_p10 = scmp.ne.s32.totalorder %s1257_s25, 0 }
  0x7c   : > { %670 = vmatmul.mubr.msk.f32.vlgmr.msra.gmra.mrb[0].mxu0 %vm294_vm0, %v296_v2  ;;  %s946_s15 = smov [#allocation11]  }
  0x7d   : > { %p853_p12 = pnand %p852_p4, %p1269_p10  ;;  %s855_s30 = sshll.u32 %s946_s15, 4  ;;  %s856_s30 = int_to_ptr.vmem [resolvable:$false] %s855_s30 }
  0x7e   : > { %v401_v27 = vld [vmem:[#allocation4] sm:$0xff]  ;;  %s857_s1 = scalar_lea.vmem %s856_s30, 256  ;;  %p858_p8 = scmp.lt.s32.totalorder %s1195_s20, %s856_s30 }
  0x7f   : > { %v376_v9 = vld [vmem:[#allocation2] sm:$0xff]  ;;  %v393_v21 = vld [vmem:[#allocation3] sm:$0xff]  ;;  %p854_p1 = pneg %p853_p12  ;;  %p859_p9 = scmp.lt.s32.totalorder %s857_s1, %s851_s28 }
  0x81   : > { %p860_p6 = por %p859_p9, %p858_p8 }
  0x83   : > { %p861_p13 = pnand %p860_p6, %p854_p1 }
 0x14f   : > { %v371_v4 = vpop.f32.mrb[0].mxu0 }
 0x150   : > { %v375_v5 = vmul.f32 0.17677669, %v371_v4  ;;  %v671_v6 = vpop.f32.mrb[1].mxu0 }
 0x152   : > { %v378_v7 = vsel %vm377_vm3, %v375_v5, -inf }
 0x153   : > { %379 = vmax.xlane.f32.xlu0 %v378_v7 }
 0x1e0   : > { %v380_v10 = vpop.xlane.xlu0 %379 }
 0x1e1   : > { %v381_v11 = vmax.f32 %v376_v9, %v380_v10 }
 0x1e3   : > { %v382_v12 = vsub.f32 %v376_v9, %v381_v11  ;;  %484 = vst.msk [vmem:[#allocation2] sm:$0xff] %vm291_vm2, %v381_v11  ;;  %387 = vperm.xlu0 %753, %v381_v11  }
 0x1e5   : > { %v383_v19 = vmul.f32 1.442695, %v382_v12 }
 0x262   : > { %v388_v14 = vpop.permute.xlu0 %387 }
 0x263   : > { %v390_v15 = vsub.f32 %v375_v5, %v388_v14 }
 0x265   : > { %v391_v16 = vmul.f32 1.442695, %v390_v15 }
 0x267   : > { %755 = vpow2.f32 %v391_v16 }
 0x268   : > { %757 = vpow2.f32 %v383_v19 }
 0x271   : > { %v756_v17 = vpop.eup %755 }
 0x272   : > { %675 = vmatmul.mubr.msk.f32.vlgmr.msra.gmra.mrb[0].mxu1 %vm377_vm3, %v756_v17  ;;  %v395_v18 = vsel %vm377_vm3, %v756_v17, 0.0  ;;  %v758_v20 = vpop.eup %757 }
 0x273   : > { %396 = vadd.xlane.f32.xlu1 %v395_v18  ;;  %v394_v22 = vmul.f32 %v758_v20, %v393_v21 }
 0x284   : > { %404 = vperm.xlu1 %754, %v758_v20  }
 0x300   : > { %v397_v23 = vpop.xlane.xlu1 %396 }
 0x301   : > { %v398_v24 = vadd.f32 %v397_v23, %v394_v22 }
 0x303   : > { %400 = vst.msk [vmem:[#allocation3] sm:$0xff] %vm291_vm2, %v398_v24 }
 0x304   : > { %v405_v28 = vpop.permute.xlu1 %404 }
 0x305   : > { %v407_v29 = vmul.f32 %v405_v28, %v401_v27 }
 0x30a   : > { %v489_v25 = vld [vmem:[#allocation3] sm:$0xff] }
 0x30b   : > { %759 = vrcp.f32 %v489_v25 }
 0x315   : > { %v760_v26 = vpop.eup %759 }
 0x316   : > { %493 = vperm.xlu1 %754, %v760_v26  }
 0x345   : > { %v478_v30 = vpop.f32.mrb[0].mxu1 }
 0x346   : > { %v482_v31 = vadd.f32 %v478_v30, %v407_v29  ;;  %v676_v32 = vpop.f32.mrb[1].mxu1 }
 0x348   : > { %483 = vst.msk [vmem:[#allocation4] sm:$0xff] %vm294_vm0, %v482_v31 }
 0x34f   : > { %v488_v33 = vld [vmem:[#allocation4] sm:$0xff] }
 0x395   : > { %v494_v34 = vpop.permute.xlu1 %493 }
 0x396   : > { %v496_v35 = vmul.f32 %v494_v34, %v488_v33 }
 0x398   : > { %497 = vst.msk [vmem:[%s286_s7] sm:$0xff] %vm294_vm0, %v496_v35 }
 0x399   : > { %864 = shalt.err (!%p861_p13)
}
 0x39a   : > { %s865_s29 = scalar_lea.hbm %s1193_s9, 128  ;;  %s869_s21 = scalar_lea.hbm %s1246_s3, 256 }
 0x39b   : > { %p866_p11 = scmp.ne.s32.totalorder %s1193_s9, %s865_s29  ;;  %p870_p7 = scmp.lt.u32.totalorder %s1193_s9, %s1246_s3 }
 0x39c   : > { %p871_p3 = scmp.lt.u32.totalorder %s869_s21, %s865_s29  ;;  %p873_p4 = scmp.lt.u32.totalorder %s865_s29, %s1193_s9 }
 0x39d   : > { %p867_p2 = pnand %p866_p11, %p1269_p10 }
 0x39e   : > { %p872_p0 = por %p871_p3, %p870_p7 }
 0x39f   : > { %p868_p5 = pneg %p867_p2 }
 0x3a0   : > { %p874_p12 = por %p873_p4, %p872_p0 }
 0x3a2   : > { %p875_p1 = pnand %p874_p12, %p868_p5 }
 0x3a4   : > { %878 = shalt.err (!%p875_p1)
}
 0x3a5   : > { %683 = dma.vmem_to_hbm [thread:$0]  (%p1269_p10), %s1195_s20, 128, %s1193_s9, %s499_s22  }
 0x3a6 PF: > { %s525_s16 = sand.u32 1, %s917_s12   ;;  %p1270_p8 = scmp.ne.s32.totalorder %s1259_s27, 0 }
 0x3a7   : > { %p1271_p9 = scmp.ge.s32.totalorder %s937_s17, 2  ;;  %s526_s4 = scalar_lea.sflag [#allocation7], %s525_s16 }
 0x3a9   : > { %p696_p6 = pnand %p1271_p9, %p1270_p8 }
 0x3ab   : > { %912 = dma.done.wait (!%p696_p6), %s526_s4, 128  }
 0x3ac   : > { %914 = vsyncadd (!%p696_p6), %s526_s4, 4294967168  ;;  %s22_s17 = sadd.s32 1, %s937_s17   ;;  %s1272_s25 = sld [smem:[#allocation17_spill]] }
 0x3ad   : > { %p19_p13 = scmp.ge.s32.totalorder %s22_s17, 4   ;;  %s1273_s15 = sld [smem:[#allocation15_spill]] }
 0x3ae   : > { %s1274_s16 = sld [smem:[#allocation16_spill]]  ;;  %s1275_s12 = smov %s921_s13 }
 0x3af   : > { %s1276_s13 = smov %s925_s14  ;;  %21 = sbr.rel (!%p19_p13) target bundleno = 10 (0xa), region = 109 }
 0x3b2   : > { %s1277_s14 = smov %s1272_s25 }
 0x3b6   :  { %531 = vsyncpa [#allocation6], 1 }
 0x3b7   :  { %533 = vsyncpa [#allocation6 + $0x1], 1 }
 0x3b8   :  { %534 = vsyncpa [#allocation9], 1 }
 0x3b9   :  { %536 = vsyncpa [#allocation9 + $0x1], 1 }
 0x3ba   :  { %537 = vsyncpa [#allocation7], 1 }
 0x3bb   :  { %539 = vsyncpa [#allocation7 + $0x1], 1 }

</bundles_post_ra>
